<compile_context>
chip_gen: v5e
topology: v5e:2x2
jax: 0.10.0
libtpu: 0.0.40
codegen_flags: <defaults>
</compile_context>

<pallas_src>
import math
import functools

import numpy as np
import jax
import jax.numpy as jnp
from jax.experimental import pallas as pl
from jax.experimental.pallas import tpu as pltpu


# ---------------------------------------------------------------------------
# Kernel 1: alpha = sigmoid(proj(conv(eouts)))  +  alpha_norm = alpha/sum*ylen
# ---------------------------------------------------------------------------
def _alpha_kernel(x_ref, w_ref, b_ref, yl_ref, alpha_ref, anorm_ref, xbuf_ref,
                  *, P):
    # x_ref:    (T, D)   encoder output for one batch element (VMEM)
    # w_ref:    (KK, D)  conv weights with the 1-wide projection folded in
    # b_ref:    (1, 1)   folded bias
    # yl_ref:   (B,)     ylens as float32 (SMEM)
    # alpha_ref:(T, 1)   sigmoid output
    # anorm_ref:(T, 1)   normalized alpha (consumed by the fire kernel)
    # xbuf_ref: (A+T+P, D) VMEM scratch, zero-padded copy of x (A = sublane-
    #           aligned top pad so the bulk copy lands on an aligned offset).
    b = pl.program_id(0)
    T, D = x_ref.shape
    KK = w_ref.shape[0]
    A = -(-P // 8) * 8          # round P up to a multiple of 8 (static)

    # In-kernel zero padding (replaces the jnp.pad HBM round trip).
    xbuf_ref[...] = jnp.zeros_like(xbuf_ref)
    xbuf_ref[A:A + T, :] = x_ref[...].astype(jnp.float32)

    # Folded conv+proj: logit[t] = b + sum_k sum_d x[t+k-P, d] * w_eff[k, d]
    acc = jnp.zeros((T, D), jnp.float32)
    for k in range(KK):                       # static unroll over taps (VPU)
        off = A - P + k
        acc = acc + xbuf_ref[off:off + T, :] * w_ref[k:k + 1, :]

    logit = jnp.sum(acc, axis=1, keepdims=True) + b_ref[...]       # (T, 1)
    alpha = jax.nn.sigmoid(logit)                                  # (T, 1)
    alpha_ref[...] = alpha.astype(alpha_ref.dtype)

    # Fused normalization: alpha / sum(alpha) * ylen
    asum = jnp.sum(alpha, axis=0, keepdims=True)                   # (1, 1)
    anorm_ref[...] = (alpha / asum * yl_ref[b]).astype(anorm_ref.dtype)


# ---------------------------------------------------------------------------
# Kernel 2: sequential integrate-and-fire loop (one batch element per program)
# ---------------------------------------------------------------------------
def _cif_fire_kernel(alpha_ref, elens_ref, ylens_ref, eouts_ref,
                     fired_ref, aws_ref, *, threshold, unroll=4):
    # alpha_ref: SMEM (B*T,) flattened alpha_norm
    # elens_ref / ylens_ref: SMEM (B,) int32
    # eouts_ref: VMEM (T, D)
    # fired_ref: VMEM (Lp1, D)
    # aws_ref:   VMEM (T, Lp1)   time-major: one write-only row per timestep
    b = pl.program_id(0)
    T, D = eouts_ref.shape
    Lp1 = fired_ref.shape[0]
    base = b * T

    fired_ref[...] = jnp.zeros_like(fired_ref)

    elen = elens_ref[b]
    ylen = ylens_ref[b]
    lane = jax.lax.broadcasted_iota(jnp.int32, (1, Lp1), 1)
    thr = jnp.float32(threshold)

    def step(t, carry):
        n_tok, acc, state = carry                   # i32, f32, (1, D) f32
        a_t = alpha_ref[base + t]
        acc = acc + a_t
        x_t = eouts_ref[pl.ds(t, 1), :].astype(jnp.float32)        # (1, D)

        active = jnp.logical_and(t <= elen - 1, n_tok < ylen)
        fire = jnp.logical_and(active, acc >= thr)
        nofire = jnp.logical_and(active, acc < thr)

        ak1 = jnp.float32(1.0) - acc
        ak2 = a_t - ak1
        sel0 = (lane == n_tok).astype(jnp.float32)                 # (1, Lp1)
        sel1 = (lane == n_tok + 1).astype(jnp.float32)

        # Time-major aws: each timestep writes exactly one (1, Lp1) row, no
        # read-modify-write (inactive steps write zeros, so no init needed).
        row = jnp.where(fire, ak1 * sel0 + ak2 * sel1,
                        jnp.where(nofire, a_t * sel0, jnp.zeros_like(sel0)))
        aws_ref[pl.ds(t, 1), :] = row.astype(aws_ref.dtype)

        @pl.when(fire)
        def _():
            fired_ref[pl.ds(n_tok, 1), :] = (state + ak1 * x_t
                                             ).astype(fired_ref.dtype)

        new_state = jnp.where(fire, ak2 * x_t,
                              jnp.where(nofire, state + a_t * x_t, state))
        new_n = jnp.where(fire, n_tok + 1, n_tok)
        new_acc = jnp.where(fire, ak2, acc)
        return (new_n, new_acc, new_state)

    init = (jnp.int32(0), jnp.float32(0.0), jnp.zeros((1, D), jnp.float32))

    # Manual x`unroll` unrolling of the sequential loop (scheduler visibility).
    n_main = (T // unroll) * unroll

    def step_u(i, carry):
        t0 = i * unroll
        for j in range(unroll):
            carry = step(t0 + j, carry)
        return carry

    carry = jax.lax.fori_loop(0, T // unroll, step_u, init)
    for t in range(n_main, T):          # static remainder (< unroll steps)
        carry = step(t, carry)


# ---------------------------------------------------------------------------
# Wrappers
# ---------------------------------------------------------------------------
def _compute_alpha(eouts, params, ylens):
    """Returns (alpha [B,T], alpha_norm [B,T])."""
    conv_w, conv_b, proj_w, proj_b = params
    B, T, D = eouts.shape
    C, Din, KK = conv_w.shape
    P = (KK - 1) // 2
    assert Din == D and C == conv_w.shape[0]

    # Fold Linear(C, 1) into the conv weights (exact up to fp reassociation).
    pvec = proj_w.reshape(C).astype(jnp.float32)
    w_eff = jnp.einsum('c,cdk->kd', pvec, conv_w.astype(jnp.float32))   # (KK,D)
    b_eff = (jnp.dot(pvec, conv_b.astype(jnp.float32))
             + proj_b.reshape(()).astype(jnp.float32)).reshape(1, 1)
    ylens_f = ylens.astype(jnp.float32)

    A = -(-P // 8) * 8
    alpha3, anorm3 = pl.pallas_call(
        functools.partial(_alpha_kernel, P=P),
        grid=(B,),
        in_specs=[
            pl.BlockSpec((None, T, D), lambda b: (b, 0, 0)),            # eouts
            pl.BlockSpec((KK, D), lambda b: (0, 0)),                    # w_eff
            pl.BlockSpec((1, 1), lambda b: (0, 0)),                     # b_eff
            pl.BlockSpec(memory_space=pltpu.MemorySpace.SMEM),          # ylens_f
        ],
        out_specs=[
            pl.BlockSpec((None, T, 1), lambda b: (b, 0, 0)),
            pl.BlockSpec((None, T, 1), lambda b: (b, 0, 0)),
        ],
        out_shape=[
            jax.ShapeDtypeStruct((B, T, 1), jnp.float32),
            jax.ShapeDtypeStruct((B, T, 1), jnp.float32),
        ],
        scratch_shapes=[pltpu.VMEM((A + T + P, D), jnp.float32)],
        compiler_params=pltpu.CompilerParams(
            dimension_semantics=("parallel",)),
    )(eouts, w_eff, b_eff, ylens_f)
    return alpha3[:, :, 0], anorm3[:, :, 0]


def _fire_call(eouts, alpha_norm, elens, ylens, threshold, max_len):
    B, T, D = eouts.shape
    Lp1 = max_len + 1
    # 1-D SMEM layout avoids 2-D SMEM row/lane padding blowup.
    anorm_flat = alpha_norm.reshape(B * T).astype(jnp.float32)

    fired, aws_tm = pl.pallas_call(
        functools.partial(_cif_fire_kernel, threshold=threshold),
        grid=(B,),
        in_specs=[
            pl.BlockSpec(memory_space=pltpu.MemorySpace.SMEM),   # alpha_norm
            pl.BlockSpec(memory_space=pltpu.MemorySpace.SMEM),   # elens
            pl.BlockSpec(memory_space=pltpu.MemorySpace.SMEM),   # ylens
            pl.BlockSpec((None, T, D), lambda b: (b, 0, 0)),     # eouts
        ],
        out_specs=[
            pl.BlockSpec((None, Lp1, D), lambda b: (b, 0, 0)),
            pl.BlockSpec((None, T, Lp1), lambda b: (b, 0, 0)),
        ],
        out_shape=[
            jax.ShapeDtypeStruct((B, Lp1, D), eouts.dtype),
            jax.ShapeDtypeStruct((B, T, Lp1), eouts.dtype),      # time-major
        ],
        compiler_params=pltpu.CompilerParams(
            dimension_semantics=("parallel",)),
    )(anorm_flat, elens.astype(jnp.int32), ylens.astype(jnp.int32), eouts)
    return fired, aws_tm


def cif_forward(eouts, elens, ylens, params, threshold=0.9):
    B, T, D = eouts.shape
    alpha, alpha_norm = _compute_alpha(eouts, params, ylens)

    # TODO(synk): max_len = ylens.max() forces a host sync (shapes are data
    # dependent); fine for eager use, would need a static max_len under jit.
    max_len = int(jax.device_get(ylens).max())

    fired, aws_tm = _fire_call(eouts, alpha_norm, elens, ylens,
                               threshold, max_len)

    eouts_fired = fired[:, :max_len]                              # [B, L, D]
    # kernel emits time-major (B, T, Lp1); present torch layout [B, 1, Lp1, T].
    aws = jnp.transpose(aws_tm, (0, 2, 1))[:, None, :, :]
    # NOTE: torch's `aws[:, :max_len]` slices the size-1 head dim (no-op).
    # TODO(synk): ylens=None path (tail fire using a leaked Python loop var in
    # the reference implementation) is not implemented.
    return eouts_fired, alpha, aws


# ---------------------------------------------------------------------------
# Pure-numpy reference (mirrors the PyTorch module, ylens-provided path)
# ---------------------------------------------------------------------------
def _ref_alpha(eouts, conv_w, conv_b, proj_w, proj_b):
    B, T, D = eouts.shape
    C, _, KK = conv_w.shape
    P = (KK - 1) // 2
    xpad = np.pad(eouts, ((0, 0), (P, P), (0, 0)))
    conv_feat = np.zeros((B, T, C), np.float32)
    for k in range(KK):
        conv_feat += np.einsum('btd,cd->btc', xpad[:, k:k + T, :], conv_w[:, :, k])
    conv_feat += conv_b[None, None, :]
    logit = conv_feat @ proj_w[0][:, None] + proj_b              # (B, T, 1)
    return 1.0 / (1.0 + np.exp(-logit[..., 0].astype(np.float32)))


def _ref_cif_loop(eouts, alpha_norm, elens, ylens, max_len, threshold):
    B, T, D = eouts.shape
    thr = np.float32(threshold)
    fired = np.zeros((B, max_len + 1, D), np.float32)
    aws = np.zeros((B, 1, max_len + 1, T), np.float32)
    n_tokens = np.zeros(B, np.int32)
    state = np.zeros((B, D), np.float32)
    acc = np.zeros(B, np.float32)
    for t in range(T):
        acc += alpha_norm[:, t]
        for b in range(B):
            if t > elens[b] - 1:
                continue
            if n_tokens[b] >= ylens[b]:
                continue
            if acc[b] >= thr:
                ak1 = np.float32(1.0) - acc[b]
                ak2 = alpha_norm[b, t] - ak1
                aws[b, 0, n_tokens[b], t] += ak1
                fired[b, n_tokens[b]] = state[b] + ak1 * eouts[b, t]
                n_tokens[b] += 1
                state[b] = ak2 * eouts[b, t]
                acc[b] = ak2
                aws[b, 0, n_tokens[b], t] += ak2
            else:
                state[b] += alpha_norm[b, t] * eouts[b, t]
                aws[b, 0, n_tokens[b], t] += alpha_norm[b, t]
    return fired[:, :max_len], aws


if __name__ == "__main__":
    B, T, D = 2, 16, 32
    C = D                      # conv_out_channels must equal enc_dim in CIF
    ksz = 2                    # conv_kernel_size -> actual kernel = 2*ksz+1 = 5
    KK = 2 * ksz + 1
    threshold = 0.9

    key = jax.random.PRNGKey(0)
    k1, k2, k3, k4 = jax.random.split(key, 4)
    conv_w = jax.random.normal(k1, (C, D, KK), jnp.float32) / math.sqrt(D * KK)
    conv_b = jax.random.normal(k2, (C,), jnp.float32) * 0.1
    proj_w = jax.random.normal(k3, (1, C), jnp.float32) / math.sqrt(C)
    proj_b = jnp.zeros((1,), jnp.float32)
    params = (conv_w, conv_b, proj_w, proj_b)

    eouts = jax.random.normal(k4, (B, T, D), jnp.float32)
    elens = jnp.array([16, 12], jnp.int32)
    ylens = jnp.array([5, 4], jnp.int32)

    eouts_fired, alpha, aws = cif_forward(eouts, elens, ylens, params, threshold)
    jax.block_until_ready((eouts_fired, alpha, aws))

    # --- correctness checks against the numpy reference ---
    alpha_ref = _ref_alpha(np.asarray(eouts), np.asarray(conv_w),
                           np.asarray(conv_b), np.asarray(proj_w),
                           np.asarray(proj_b))
    assert np.allclose(np.asarray(alpha), alpha_ref, atol=2e-4, rtol=2e-4), \
        "alpha mismatch"

    # Recover the exact alpha_norm the fire kernel consumed (kernel 1 is
    # deterministic, so this re-run is bit-identical to what cif_forward used).
    _, anorm = _compute_alpha(eouts, params, ylens)
    anorm_np = np.asarray(anorm)
    alpha_np = np.asarray(alpha)
    anorm_expect = alpha_np / alpha_np.sum(1, keepdims=True) \
        * np.asarray(ylens, np.float32)[:, None]
    assert np.allclose(anorm_np, anorm_expect, atol=1e-4, rtol=1e-4), \
        "alpha_norm mismatch"

    max_len = int(np.asarray(ylens).max())
    fired_ref, aws_ref = _ref_cif_loop(
        np.asarray(eouts), anorm_np, np.asarray(elens), np.asarray(ylens),
        max_len, threshold)

    assert eouts_fired.shape == (B, max_len, D)
    assert aws.shape == (B, 1, max_len + 1, T)
    assert np.allclose(np.asarray(eouts_fired), fired_ref, atol=1e-5, rtol=1e-5), \
        "eouts_fired mismatch"
    assert np.allclose(np.asarray(aws), aws_ref, atol=1e-5, rtol=1e-5), \
        "aws mismatch"

    print("KERNEL_OK")
</pallas_src>

<mosaic_0001>
module attributes {stable_mosaic.version = 11 : i64} {
  func.func @_alpha_kernel(%arg0: i32, %arg1: memref<1x16x32xf32, #tpu.memory_space<vmem>>, %arg2: memref<5x32xf32, #tpu.memory_space<vmem>>, %arg3: memref<1x1xf32, #tpu.memory_space<vmem>>, %arg4: memref<2xf32, #tpu.memory_space<smem>>, %arg5: memref<1x16x1xf32, #tpu.memory_space<vmem>>, %arg6: memref<1x16x1xf32, #tpu.memory_space<vmem>>, %arg7: memref<26x32xf32, #tpu.memory_space<vmem>>) attributes {dimension_semantics = [#tpu.dimension_semantics<parallel>], iteration_bounds = array<i64: 2>, scalar_prefetch = 0 : i64, scratch_operands = 1 : i64, tpu.core_type = #tpu.core_type<tc>, window_params = [{transform_indices = @transform_0, window_bounds = array<i64: 1, 16, 32>}, {pipeline_mode = #tpu.pipeline_mode<synchronous>, transform_indices = @transform_1, window_bounds = array<i64: 5, 32>}, {pipeline_mode = #tpu.pipeline_mode<synchronous>, transform_indices = @transform_2, window_bounds = array<i64: 1, 1>}, {transform_indices = @transform_3, window_bounds = array<i64: 2>}, {transform_indices = @transform_4, window_bounds = array<i64: 1, 16, 1>}, {transform_indices = @transform_5, window_bounds = array<i64: 1, 16, 1>}]} {
    %cst = arith.constant 0.000000e+00 : f32
    %0 = vector.broadcast %cst : f32 to vector<26x32xf32>
    %c0 = arith.constant 0 : index
    %c0_0 = arith.constant 0 : index
    %1 = vector.load %arg7[%c0, %c0_0] : memref<26x32xf32, #tpu.memory_space<vmem>>, vector<26x32xf32>
    tpu.vector_store %arg7[%c0, %c0_0], %0 {strides = array<i32>} : memref<26x32xf32, #tpu.memory_space<vmem>>, vector<26x32xf32>,
    %c0_1 = arith.constant 0 : index
    %c0_2 = arith.constant 0 : index
    %c0_3 = arith.constant 0 : index
    %2 = vector.load %arg1[%c0_1, %c0_2, %c0_3] : memref<1x16x32xf32, #tpu.memory_space<vmem>>, vector<1x16x32xf32>
    %3 = vector.shape_cast %2 : vector<1x16x32xf32> to vector<16x32xf32>
    %c8 = arith.constant 8 : index
    %c0_4 = arith.constant 0 : index
    %4 = vector.load %arg7[%c8, %c0_4] : memref<26x32xf32, #tpu.memory_space<vmem>>, vector<16x32xf32>
    tpu.vector_store %arg7[%c8, %c0_4], %3 {strides = array<i32>} : memref<26x32xf32, #tpu.memory_space<vmem>>, vector<16x32xf32>,
    %cst_5 = arith.constant 0.000000e+00 : f32
    %5 = vector.broadcast %cst_5 : f32 to vector<16x32xf32>
    %c6 = arith.constant 6 : index
    %c0_6 = arith.constant 0 : index
    %6 = vector.load %arg7[%c6, %c0_6] : memref<26x32xf32, #tpu.memory_space<vmem>>, vector<16x32xf32>
    %c0_7 = arith.constant 0 : index
    %c0_8 = arith.constant 0 : index
    %7 = vector.load %arg2[%c0_7, %c0_8] : memref<5x32xf32, #tpu.memory_space<vmem>>, vector<1x32xf32>
    %8 = vector.broadcast %7 : vector<1x32xf32> to vector<16x32xf32>
    %9 = arith.mulf %6, %8 : vector<16x32xf32>
    %10 = arith.addf %5, %9 : vector<16x32xf32>
    %c7 = arith.constant 7 : index
    %c0_9 = arith.constant 0 : index
    %11 = vector.load %arg7[%c7, %c0_9] : memref<26x32xf32, #tpu.memory_space<vmem>>, vector<16x32xf32>
    %c1 = arith.constant 1 : index
    %c0_10 = arith.constant 0 : index
    %12 = vector.load %arg2[%c1, %c0_10] : memref<5x32xf32, #tpu.memory_space<vmem>>, vector<1x32xf32>
    %13 = vector.broadcast %12 : vector<1x32xf32> to vector<16x32xf32>
    %14 = arith.mulf %11, %13 : vector<16x32xf32>
    %15 = arith.addf %10, %14 : vector<16x32xf32>
    %c8_11 = arith.constant 8 : index
    %c0_12 = arith.constant 0 : index
    %16 = vector.load %arg7[%c8_11, %c0_12] : memref<26x32xf32, #tpu.memory_space<vmem>>, vector<16x32xf32>
    %c2 = arith.constant 2 : index
    %c0_13 = arith.constant 0 : index
    %17 = vector.load %arg2[%c2, %c0_13] : memref<5x32xf32, #tpu.memory_space<vmem>>, vector<1x32xf32>
    %18 = vector.broadcast %17 : vector<1x32xf32> to vector<16x32xf32>
    %19 = arith.mulf %16, %18 : vector<16x32xf32>
    %20 = arith.addf %15, %19 : vector<16x32xf32>
    %c9 = arith.constant 9 : index
    %c0_14 = arith.constant 0 : index
    %21 = vector.load %arg7[%c9, %c0_14] : memref<26x32xf32, #tpu.memory_space<vmem>>, vector<16x32xf32>
    %c3 = arith.constant 3 : index
    %c0_15 = arith.constant 0 : index
    %22 = vector.load %arg2[%c3, %c0_15] : memref<5x32xf32, #tpu.memory_space<vmem>>, vector<1x32xf32>
    %23 = vector.broadcast %22 : vector<1x32xf32> to vector<16x32xf32>
    %24 = arith.mulf %21, %23 : vector<16x32xf32>
    %25 = arith.addf %20, %24 : vector<16x32xf32>
    %c10 = arith.constant 10 : index
    %c0_16 = arith.constant 0 : index
    %26 = vector.load %arg7[%c10, %c0_16] : memref<26x32xf32, #tpu.memory_space<vmem>>, vector<16x32xf32>
    %c4 = arith.constant 4 : index
    %c0_17 = arith.constant 0 : index
    %27 = vector.load %arg2[%c4, %c0_17] : memref<5x32xf32, #tpu.memory_space<vmem>>, vector<1x32xf32>
    %28 = vector.broadcast %27 : vector<1x32xf32> to vector<16x32xf32>
    %29 = arith.mulf %26, %28 : vector<16x32xf32>
    %30 = arith.addf %25, %29 : vector<16x32xf32>
    %cst_18 = arith.constant dense<0.000000e+00> : vector<16xf32>
    %31 = vector.multi_reduction <add>, %30, %cst_18 [1] : vector<16x32xf32> to vector<16xf32>
    %32 = vector.shape_cast %31 : vector<16xf32> to vector<16x1xf32>
    %c0_19 = arith.constant 0 : index
    %c0_20 = arith.constant 0 : index
    %33 = vector.load %arg3[%c0_19, %c0_20] : memref<1x1xf32, #tpu.memory_space<vmem>>, vector<1x1xf32>
    %34 = vector.broadcast %33 : vector<1x1xf32> to vector<16x1xf32>
    %35 = arith.addf %32, %34 : vector<16x1xf32>
    %36 = arith.negf %35 : vector<16x1xf32>
    %37 = math.exp %36 : vector<16x1xf32>
    %cst_21 = arith.constant 1.000000e+00 : f32
    %38 = vector.broadcast %cst_21 : f32 to vector<16x1xf32>
    %39 = arith.addf %38, %37 : vector<16x1xf32>
    %40 = arith.divf %38, %39 : vector<16x1xf32>
    %c0_22 = arith.constant 0 : index
    %c0_23 = arith.constant 0 : index
    %c0_24 = arith.constant 0 : index
    %41 = vector.load %arg5[%c0_22, %c0_23, %c0_24] : memref<1x16x1xf32, #tpu.memory_space<vmem>>, vector<1x16x1xf32>
    %42 = vector.shape_cast %41 : vector<1x16x1xf32> to vector<16x1xf32>
    %43 = vector.shape_cast %40 : vector<16x1xf32> to vector<1x16x1xf32>
    tpu.vector_store %arg5[%c0_22, %c0_23, %c0_24], %43 {strides = array<i32>} : memref<1x16x1xf32, #tpu.memory_space<vmem>>, vector<1x16x1xf32>,
    %cst_25 = arith.constant dense<0.000000e+00> : vector<1xf32>
    %44 = vector.multi_reduction <add>, %40, %cst_25 [0] : vector<16x1xf32> to vector<1xf32>
    %45 = vector.shape_cast %44 : vector<1xf32> to vector<1x1xf32>
    %46 = vector.broadcast %45 : vector<1x1xf32> to vector<16x1xf32>
    %47 = arith.divf %40, %46 : vector<16x1xf32>
    %48 = arith.index_cast %arg0 : i32 to index
    %49 = memref.load %arg4[%48] : memref<2xf32, #tpu.memory_space<smem>>
    %50 = vector.broadcast %49 : f32 to vector<16x1xf32>
    %51 = arith.mulf %47, %50 : vector<16x1xf32>
    %c0_26 = arith.constant 0 : index
    %c0_27 = arith.constant 0 : index
    %c0_28 = arith.constant 0 : index
    %52 = vector.load %arg6[%c0_26, %c0_27, %c0_28] : memref<1x16x1xf32, #tpu.memory_space<vmem>>, vector<1x16x1xf32>
    %53 = vector.shape_cast %52 : vector<1x16x1xf32> to vector<16x1xf32>
    %54 = vector.shape_cast %51 : vector<16x1xf32> to vector<1x16x1xf32>
    tpu.vector_store %arg6[%c0_26, %c0_27, %c0_28], %54 {strides = array<i32>} : memref<1x16x1xf32, #tpu.memory_space<vmem>>, vector<1x16x1xf32>,
    return
  }
  func.func @transform_0(%arg0: i32) -> (i32, i32, i32) {
    %c0_i32 = arith.constant 0 : i32
    %c0_i32_0 = arith.constant 0 : i32
    %c0_i32_1 = arith.constant 0 : i32
    return %arg0, %c0_i32, %c0_i32_0 : i32, i32, i32
  }
  func.func @transform_1(%arg0: i32) -> (i32, i32) {
    %c0_i32 = arith.constant 0 : i32
    %c0_i32_0 = arith.constant 0 : i32
    %c0_i32_1 = arith.constant 0 : i32
    return %c0_i32, %c0_i32_0 : i32, i32
  }
  func.func @transform_2(%arg0: i32) -> (i32, i32) {
    %c0_i32 = arith.constant 0 : i32
    %c0_i32_0 = arith.constant 0 : i32
    %c0_i32_1 = arith.constant 0 : i32
    return %c0_i32, %c0_i32_0 : i32, i32
  }
  func.func @transform_3(%arg0: i32) -> i32 {
    %c0_i32 = arith.constant 0 : i32
    %c0_i32_0 = arith.constant 0 : i32
    return %c0_i32 : i32
  }
  func.func @transform_4(%arg0: i32) -> (i32, i32, i32) {
    %c0_i32 = arith.constant 0 : i32
    %c0_i32_0 = arith.constant 0 : i32
    %c0_i32_1 = arith.constant 0 : i32
    return %arg0, %c0_i32, %c0_i32_0 : i32, i32, i32
  }
  func.func @transform_5(%arg0: i32) -> (i32, i32, i32) {
    %c0_i32 = arith.constant 0 : i32
    %c0_i32_0 = arith.constant 0 : i32
    %c0_i32_1 = arith.constant 0 : i32
    return %arg0, %c0_i32, %c0_i32_0 : i32, i32, i32
  }
}

</mosaic_0001>

<bundles_post_ra>
// kernel: tpu_custom_call.1
= control target key start
LH: loop header
LB: loop body
LE: loop exit
PB: predicated region body
PF: predicated region fallthrough
CT: control target
= control target key end

     0   :  { %s946_s0 = inlined_call_operand.hbm [shape: f32[2,16,32], index: 0, kind: input, shape index: {}]   ;;  %s947_s1 = inlined_call_operand.hbm [shape: f32[5,32], index: 1, kind: input, shape index: {}]   ;;  %s948_s2 = inlined_call_operand.<no memory space> [shape: f32[1,1], index: 2, kind: input, shape index: {}]   ;;  %s949_s3 = inlined_call_operand.vmem [shape: f32[2], index: 3, kind: input, shape index: {}]   ;;  %s950_s4 = inlined_call_operand.vmem [shape: f32[2,16,1], index: 4, kind: output, shape index: {0}]   ;;  %s951_s5 = inlined_call_operand.vmem [shape: f32[2,16,1], index: 5, kind: output, shape index: {1}]  }
   0x1   :  { %v11_v0 = vstv %s948_s2 }
   0x2   :  { %12 = vst [vmem:[#allocation3] sm:$0x1] %v11_v0 }
   0x3   :  { %13 = vsyncpa [#allocation5], 0 }
   0x4   :  { %15 = vsyncpa [#allocation5 + $0x1], 0 }
   0x5   :  { %16 = vsyncpa [#allocation8], 0 }
   0x6   :  { %17 = vsyncpa [#allocation6], 0  ;;  %s806_s20 = smov 0   ;;  %s808_s21 = smov 0  }
   0x7   :  { %s810_s22 = smov 0   ;;  %s812_s23 = smov 0  }
   0x8 LB: > { %s825_s2 = sadd.s32 4294967295, %s766_s23   ;;  %s828_s24 = sadd.s32 1, %s766_s23   ;;  %s766_s23 = sphi %s812_s23, %s959_s23   ;;  %s762_s22 = sphi %s810_s22, %s958_s22   ;;  %s758_s21 = sphi %s808_s21, %s957_s21   ;;  %s754_s20 = sphi %s806_s20, %s956_s20  }
   0x9   : > { %s27_s25 = ssub.s32 %s766_s23, %s828_s24  ;;  %s30_s26 = sadd.s32 1, %s762_s22 }
   0xa   : > { %p28_p0 = scmp.eq.s32.totalorder %s27_s25, 0  ;;  %p37_p1 = scmp.ne.s32.totalorder %s762_s22, %s758_s21 }
   0xb   : > { %p38_p2 = scmp.eq.s32.totalorder %s766_s23, 0  ;;  %p43_p3 = scmp.ne.s32.totalorder %s758_s21, %s754_s20 }
   0xc   : > { %s838_s27 = scalar_select %p28_p0, %s762_s22, %s30_s26  }
   0xd   : > { %p840_p4 = por %p38_p2, %p37_p1  ;;  %p44_p5 = scmp.eq.s32.totalorder %s825_s2, 0 }
   0xe   : > { %p548_p6 = scmp.ge.s32.totalorder %s766_s23, 1  ;;  %p169_p7 = scmp.lt.s32.totalorder %s766_s23, 3 }
   0xf   : > { %p849_p8 = por %p44_p5, %p43_p3  ;;  %s181_s8 = sshll.u32 %s947_s1, 4  ;;  %s182_s8 = int_to_ptr.hbm [resolvable:$true] %s181_s8 }
  0x10   : > { %p853_p9 = pnand %p548_p6, %p169_p7  ;;  %s768_s9 = smov [#allocation7]  }
  0x11   : > { %s183_s10 = sshll.u32 %s768_s9, 4  ;;  %p593_p12 = scmp.lt.s32.totalorder %s766_s23, 2  ;;  %s184_s10 = int_to_ptr.vmem [resolvable:$true] %s183_s10 }
  0x12   : > { %p580_p10 = pneg %p853_p9  ;;  %s196_s13 = sshll.u32 %s949_s3, 4  ;;  %s197_s13 = int_to_ptr.vmem [resolvable:$true] %s196_s13 }
  0x13   : > { %p870_p13 = pnand %p593_p12, %p840_p4  ;;  %s769_s15 = smov [#allocation9]  }
  0x14   : > { %p581_p11 = pnand %p580_p10, %p44_p5  ;;  %s207_s16 = sand.u32 1, %s762_s22  }
  0x15   : > { %s567_s17 = sshll.u32 %s766_s23, 4  ;;  %s552_s18 = sshll.u32 %s207_s16, 4 }
  0x16   : > { %583 = dma.hbm_to_vmem [thread:$0]  (!%p581_p11), %s182_s8, 128, %s184_s10, [#allocation8]  }
  0x17   : > { %586 = dma.vmem_to_smem (!%p581_p11), %s197_s13, 16, %s769_s15, [#allocation6]  }
  0x18   : > { %s216_s25 = scalar_lea.hbm %s946_s0, %s567_s17  ;;  %s211_s6 = scalar_lea.vmem [#allocation4], %s552_s18 }
  0x19   : > { %s217_s26 = sshll.u32 %s216_s25, 4  ;;  %s219_s7 = sshll.u32 %s211_s6, 4  ;;  %s218_s26 = int_to_ptr.hbm [resolvable:$true] %s217_s26  ;;  %s220_s7 = int_to_ptr.vmem [resolvable:$true] %s219_s7 }
  0x1a   : > { %s208_s28 = scalar_lea.sflag [#allocation5], %s207_s16  ;;  %s694_s9 = sshra.s32 %s218_s26, 4  ;;  %s695_s9 = int_to_ptr.hbm [resolvable:$true] %s694_s9 }
  0x1b   : > { %s696_s8 = scalar_lea.hbm %s695_s9, 16  ;;  %p698_p1 = pneg %p870_p13 }
  0x1c   : > { %p697_p0 = scmp.ne.s32.totalorder %s695_s9, %s696_s8  ;;  %s701_s11 = scalar_lea.hbm %s946_s0, 32 }
  0x1d   : > { %p702_p4 = scmp.lt.s32.totalorder %s695_s9, %s946_s0  ;;  %p703_p6 = scmp.lt.s32.totalorder %s701_s11, %s696_s8 }
  0x1e   : > { %p699_p2 = pnand %p698_p1, %p697_p0 }
  0x1f   : > { %p704_p7 = por %p703_p6, %p702_p4 }
  0x20   : > { %p700_p3 = pneg %p699_p2 }
  0x22   : > { %p705_p10 = pnand %p704_p7, %p700_p3 }
  0x24   : > { %708 = shalt.err (!%p705_p10)
}
  0x25   : > { %s770_s15 = smov 128   ;;  %s771_s16 = smov 8  }
  0x26   : > { %590 = dma.hbm_to_vmem [thread:$0]  (!%p870_p13), %s218_s26, 256, %s220_s7, %s208_s28, %s770_s15, %s770_s15, %s771_s16  }
  0x27   : > { %231 = sbr.rel (%p853_p9) target bundleno = 268 (0x10c), region = 36  ;;  %s233_s17 = sand.u32 (!%p853_p9), 1, %s758_s21  }
  0x28   : > { %s556_s18 = sshll.u32 (!%p853_p9), %s233_s17, 4  ;;  %s234_s19 = scalar_lea.sflag (!%p853_p9), [#allocation5], %s233_s17 }
  0x29   : > { %s237_s20 = scalar_lea.vmem (!%p853_p9), [#allocation4], %s556_s18 }
  0x2c   : > { %741 = dma.done.wait (%p849_p8), %s234_s19, 256  }
  0x2d   : > { %743 = vsyncadd (%p849_p8), %s234_s19, 4294967040 }
  0x2e   : > { %745 = dma.done.wait (%p44_p5), [#allocation8], 128  }
  0x2f   : > { %747 = vsyncadd (%p44_p5), [#allocation8], 4294967168 }
  0x30   : > { %749 = dma.done.wait (%p44_p5), [#allocation6], 16  }
  0x31   : > { %751 = vsyncadd (%p44_p5), [#allocation6], 4294967280 }
  0x32   : > { %253 = sfence }
  0x33   : > { %vm291_vm0 = vcmask 261120   ;;  %v772_v1 = vmov 0.0   ;;  %vm295_vm1 = vcmask 254976   ;;  %v297_v2 = vld [vmem:[%s237_s20] sm:$0xff]  ;;  %v298_v3 = vld [vmem:[%s237_s20 + $0x8] sm:$0xff]  ;;  %p281_p5 = scmp.lt.s32.totalorder %s825_s2, 1 }
  0x34   : > { %292 = vst.msk [vmem:[#allocation2] sm:$0xff] %vm291_vm0, %v772_v1  ;;  %v633_v4 = vld [vmem:[#allocation7] ss:$0 sm:$0xff]  ;;  %v634_v5 = vld [vmem:[#allocation7 + $0x1] ss:$0 sm:$0xff]  ;;  %vm391_vm4 = vcmask 7168  }
  0x35   : > { %293 = vst.msk [vmem:[#allocation2 + $0x8] sm:$0xff] %vm291_vm0, %v772_v1  ;;  %v635_v6 = vld [vmem:[#allocation7 + $0x2] ss:$0 sm:$0xff]  ;;  %v636_v7 = vld [vmem:[#allocation7 + $0x3] ss:$0 sm:$0xff]  ;;  %s913_s29 = scalar_select %p281_p5, %s825_s2, 1 }
  0x36   : > { %294 = vst.msk [vmem:[#allocation2 + $0x10] sm:$0xff] %vm291_vm0, %v772_v1  ;;  %v637_v8 = vld [vmem:[#allocation7 + $0x4] ss:$0 sm:$0xff]  ;;  %v638_v39 = vld [vmem:[#allocation3] ss:$0 sm:$0xff]  ;;  %s419_s6 = sld [smem:[#allocation9 + %s825_s2]] }
  0x37   : > { %296 = vst.msk [vmem:[#allocation2 + $0x18] sm:$0x3] %vm295_vm1, %v772_v1  ;;  %s568_s30 = sshll.u32 %s913_s29, 4 }
  0x38   : > { %299 = vst.msk [vmem:[#allocation2 + $0x8] sm:$0xff] %vm291_vm0, %v297_v2  ;;  %s285_s26 = scalar_lea.vmem %s950_s4, %s568_s30  ;;  %s290_s2 = scalar_lea.vmem %s951_s5, %s568_s30 }
  0x39   : > { %300 = vst.msk [vmem:[#allocation2 + $0x10] sm:$0xff] %vm291_vm0, %v298_v3 }
  0x3f   : > { %v301_v9 = vld [vmem:[#allocation2 + $0x6] sm:$0xff] }
  0x40   : > { %v309_v10 = vld [vmem:[#allocation2 + $0x7] sm:$0xff]  ;;  %v305_v12 = vmul.f32 %v633_v4, %v301_v9  ;;  %v310_v19 = vld [vmem:[#allocation2 + $0xf] sm:$0xff] }
  0x41   : > { %v317_v11 = vld [vmem:[#allocation2 + $0x8] sm:$0xff]  ;;  %v313_v13 = vmul.f32 %v634_v5, %v309_v10  ;;  %v318_v20 = vld [vmem:[#allocation2 + $0x10] sm:$0xff]  ;;  %v314_v24 = vmul.f32 %v634_v5, %v310_v19 }
  0x42   : > { %v321_v14 = vmul.f32 %v635_v6, %v317_v11  ;;  %v325_v15 = vld [vmem:[#allocation2 + $0x9] sm:$0xff]  ;;  %v326_v21 = vld [vmem:[#allocation2 + $0x11] sm:$0xff]  ;;  %v322_v25 = vmul.f32 %v635_v6, %v318_v20 }
  0x43   : > { %v333_v16 = vld [vmem:[#allocation2 + $0xa] sm:$0xff]  ;;  %v315_v22 = vadd.f32 %v313_v13, %v305_v12  ;;  %v329_v23 = vmul.f32 %v636_v7, %v325_v15  ;;  %v330_v29 = vmul.f32 %v636_v7, %v326_v21  ;;  %v334_v30 = vld [vmem:[#allocation2 + $0x12] sm:$0xff] }
  0x44   : > { %v302_v17 = vld [vmem:[#allocation2 + $0xe] sm:$0xff]  ;;  %v337_v27 = vmul.f32 %v637_v8, %v333_v16  ;;  %v338_v35 = vmul.f32 %v637_v8, %v334_v30 }
  0x45   : > { %v306_v18 = vmul.f32 %v633_v4, %v302_v17  ;;  %v323_v26 = vadd.f32 %v321_v14, %v315_v22 }
  0x47   : > { %v316_v28 = vadd.f32 %v314_v24, %v306_v18  ;;  %v331_v31 = vadd.f32 %v329_v23, %v323_v26  ;;  %v420_v24 = vstv %s419_s6 }
  0x49   : > { %v324_v32 = vadd.f32 %v322_v25, %v316_v28  ;;  %v339_v33 = vadd.f32 %v337_v27, %v331_v31 }
  0x4b   : > { %v332_v34 = vadd.f32 %v330_v29, %v324_v32  ;;  %v341_v36 = vsel %vm291_vm0, %v339_v33, 0.0 }
  0x4c   : > { %342 = vadd.xlane.f32.xlu0 %v341_v36 }
  0x4d   : > { %v340_v37 = vadd.f32 %v338_v35, %v332_v34 }
  0x4f   : > { %v344_v38 = vsel %vm291_vm0, %v340_v37, 0.0 }
  0x54   : > { %345 = vadd.xlane.f32.xlu0 %v344_v38 }
  0xbf   : > { %v343_v40 = vpop.xlane.xlu0 %342 }
  0xc0   : > { %v351_v41 = vadd.f32 %v638_v39, %v343_v40 }
  0xc2   : > { %v563_v42 = vmul.f32 -1.442695, %v351_v41 }
  0xc4   : > { %639 = vpow2.f32 %v563_v42 }
  0xc7   : > { %v346_v43 = vpop.xlane.xlu0 %345 }
  0xc8   : > { %v352_v44 = vadd.f32 %v638_v39, %v346_v43 }
  0xca   : > { %v640_v45 = vpop.eup %639  ;;  %v564_v46 = vmul.f32 -1.442695, %v352_v44 }
  0xcb   : > { %v359_v47 = vadd.f32 1.0, %v640_v45 }
  0xcc   : > { %641 = vpow2.f32 %v564_v46 }
  0xcd   : > { %643 = vrcp.f32 %v359_v47  ;;  %v372_v53 = vand.u32 2147483648, %v359_v47  ;;  %v370_v55 = vand.u32 2147483647, %v359_v47  ;;  %vm366_vm3 = vweird.f32 %v359_v47 }
  0xcf   : > { %v373_v58 = vor.u32 1.1754944e-38, %v372_v53  ;;  %vm371_vm6 = vcmp.eq.f32.partialorder %v370_v55, 8.507059e+37 }
  0xd2   : > { %v642_v48 = vpop.eup %641 }
  0xd3   : > { %v644_v49 = vpop.eup %643  ;;  %v360_v50 = vadd.f32 1.0, %v642_v48 }
  0xd4   : > { %v362_v51 = vmul.f32 %v644_v49, %v359_v47  ;;  %vm367_vm2 = vweird.f32 %v644_v49 }
  0xd5   : > { %645 = vrcp.f32 %v360_v50  ;;  %vm368_vm5 = vmor %vm366_vm3, %vm367_vm2  ;;  %v387_v63 = vand.u32 2147483648, %v360_v50  ;;  %v385_v1 = vand.u32 2147483647, %v360_v50  ;;  %vm381_vm8 = vweird.f32 %v360_v50 }
  0xd6   : > { %v363_v52 = vsub.f32 1.0, %v362_v51 }
  0xd7   : > { %v388_v3 = vor.u32 1.1754944e-38, %v387_v63  ;;  %vm386_vm10 = vcmp.eq.f32.partialorder %v385_v1, 8.507059e+37 }
  0xd8   : > { %v364_v54 = vmul.f32 %v644_v49, %v363_v52 }
  0xda   : > { %v365_v56 = vadd.f32 %v644_v49, %v364_v54 }
  0xdb   : > { %v646_v57 = vpop.eup %645 }
  0xdc   : > { %v369_v59 = vsel %vm368_vm5, %v644_v49, %v365_v56  ;;  %v377_v60 = vmul.f32 %v646_v57, %v360_v50  ;;  %vm382_vm7 = vweird.f32 %v646_v57 }
  0xdd   : > { %v374_v61 = vsel %vm371_vm6, %v373_v58, %v369_v59  ;;  %vm383_vm9 = vmor %vm381_vm8, %vm382_vm7 }
  0xde   : > { %392 = vst.msk [vmem:[%s285_s26] sm:$0xff] %vm391_vm4, %v374_v61  ;;  %v378_v62 = vsub.f32 1.0, %v377_v60  ;;  %v394_v6 = vsel %vm391_vm4, %v374_v61, 0.0 }
  0xe0   : > { %v379_v0 = vmul.f32 %v646_v57, %v378_v62 }
  0xe2   : > { %v380_v2 = vadd.f32 %v646_v57, %v379_v0 }
  0xe4   : > { %v384_v4 = vsel %vm383_vm9, %v646_v57, %v380_v2 }
  0xe5   : > { %v389_v5 = vsel %vm386_vm10, %v388_v3, %v384_v4 }
  0xe6   : > { %393 = vst.msk [vmem:[%s285_s26 + $0x8] sm:$0xff] %vm391_vm4, %v389_v5  ;;  %v395_v7 = vsel %vm391_vm4, %v389_v5, 0.0 }
  0xe7   : > { %v396_v8 = vadd.f32 %v395_v7, %v394_v6 }
  0xe9   : > { %v397_v9 = vrot.slane %v396_v8, 4 }
  0xeb   : > { %v398_v10 = vadd.f32 %v397_v9, %v396_v8 }
  0xed   : > { %v399_v11 = vrot.slane %v398_v10, 2 }
  0xef   : > { %v400_v12 = vadd.f32 %v399_v11, %v398_v10 }
  0xf1   : > { %v401_v13 = vrot.slane %v400_v12, 1 }
  0xf3   : > { %v402_v14 = vadd.f32 %v401_v13, %v400_v12 }
  0xf5   : > { %647 = vrcp.f32 %v402_v14  ;;  %v414_v18 = vand.u32 2147483648, %v402_v14  ;;  %v412_v20 = vand.u32 2147483647, %v402_v14  ;;  %vm408_vm12 = vweird.f32 %v402_v14 }
  0xf7   : > { %v415_v22 = vor.u32 1.1754944e-38, %v414_v18  ;;  %vm413_vm14 = vcmp.eq.f32.partialorder %v412_v20, 8.507059e+37 }
  0xfb   : > { %v648_v15 = vpop.eup %647 }
  0xfc   : > { %v404_v16 = vmul.f32 %v648_v15, %v402_v14  ;;  %vm409_vm11 = vweird.f32 %v648_v15 }
  0xfd   : > { %vm410_vm13 = vmor %vm408_vm12, %vm409_vm11 }
  0xfe   : > { %v405_v17 = vsub.f32 1.0, %v404_v16 }
 0x100   : > { %v406_v19 = vmul.f32 %v648_v15, %v405_v17 }
 0x102   : > { %v407_v21 = vadd.f32 %v648_v15, %v406_v19 }
 0x104   : > { %v411_v23 = vsel %vm410_vm13, %v648_v15, %v407_v21 }
 0x105   : > { %v416_v25 = vsel %vm413_vm14, %v415_v22, %v411_v23 }
 0x106   : > { %v417_v26 = vmul.f32 %v416_v25, %v374_v61  ;;  %v418_v27 = vmul.f32 %v416_v25, %v389_v5 }
 0x108   : > { %v421_v28 = vmul.f32 %v420_v24, %v417_v26  ;;  %v422_v29 = vmul.f32 %v420_v24, %v418_v27 }
 0x10a   : > { %423 = vst.msk [vmem:[%s290_s2] sm:$0xff] %vm391_vm4, %v421_v28 }
 0x10b   : > { %424 = vst.msk [vmem:[%s290_s2 + $0x8] sm:$0xff] %vm391_vm4, %v422_v29 }
 0x10c PF: > { %p20_p8 = scmp.ge.s32.totalorder %s828_s24, 4   ;;  %s956_s20 = smov %s758_s21 }
 0x10d   : > { %s957_s21 = smov %s762_s22  ;;  %s958_s22 = smov %s838_s27 }
 0x10e   : > { %s959_s23 = smov %s828_s24  ;;  %22 = sbr.rel (!%p20_p8) target bundleno = 8 (0x8), region = 97 }
 0x113   :  { %462 = vsyncpa [#allocation5], 1 }
 0x114   :  { %464 = vsyncpa [#allocation5 + $0x1], 1 }
 0x115   :  { %465 = vsyncpa [#allocation8], 1 }
 0x116   :  { %466 = vsyncpa [#allocation6], 1 }
 0x117   :  { %468 = vsyncpa [#allocation6 + $0x1], 1 }

</bundles_post_ra>
